<compile_context>
chip_gen: v7x
topology: tpu7x:2x2x1
jax: 0.10.0
libtpu: 0.0.40
codegen_flags: <defaults>
</compile_context>

<pallas_src>
import functools

import jax
import jax.numpy as jnp
from jax.experimental import pallas as pl
from jax.experimental.pallas import tpu as pltpu


def qnetwork_kernel(x_ref, w1_ref, b1_ref, w2_ref, b2_ref, w3_ref, b3_ref,
                    out_ref):
    cdt = w1_ref.dtype                      # compute dtype: f32 or bf16
    # In-kernel activation cast (no-op for f32, free VPU op for bf16);
    # all matmuls accumulate in f32, bias-add/ReLU epilogues run in f32.
    x = x_ref[...].astype(cdt)
    h1 = jnp.dot(x, w1_ref[...], preferred_element_type=jnp.float32)
    h1 = jnp.maximum(h1 + b1_ref[...], 0.0)
    h2 = jnp.dot(h1.astype(cdt), w2_ref[...], preferred_element_type=jnp.float32)
    h2 = jnp.maximum(h2 + b2_ref[...], 0.0)
    q = jnp.dot(h2.astype(cdt), w3_ref[...], preferred_element_type=jnp.float32)
    # Direct (tb, n_actions) store: tiny vs. h1/h2 traffic, minimal HBM writes.
    out_ref[...] = (q + b3_ref[...]).astype(out_ref.dtype)


def _round_up(n, m):
    return ((n + m - 1) // m) * m


def prepare_params(params, *, use_bf16=False):
    """One-time parameter preparation (call outside the training/eval loop).

    * Biases are reshaped to (1, out_features) float32 (handles 1-D biases).
    * Weights are optionally cast to bf16 for the MXU (f32 accumulation and
      f32 epilogues stay in the kernel). Recommended for large-batch
      throughput on v6e/v7x; keep f32 when tight numerical parity is needed.
    """
    wdt = jnp.bfloat16 if use_bf16 else jnp.float32
    prepared = {}
    for wk, bk in (("w1", "b1"), ("w2", "b2"), ("w3", "b3")):
        w = jnp.asarray(params[wk])
        b = jnp.asarray(params[bk], dtype=jnp.float32).reshape(1, -1)
        assert b.shape[1] == w.shape[1], f"bias/weight mismatch for {wk}/{bk}"
        prepared[wk] = w.astype(wdt)
        prepared[bk] = b
    return prepared


@functools.partial(jax.jit, static_argnames=("block_b",))
def qnetwork_forward(x, params, *, block_b=2048):
    """x: (B, obs_dim) float32. params: output of prepare_params().

    block_b: batch tile for large B. 2048 keeps per-grid-step overhead small
             while total VMEM stays at a few MB (well under the 32 MiB scoped
             default on v5e/v6e/v7x). Sweep 1024-4096 if tuning.
    """
    w1, b1 = params["w1"], params["b1"]
    w2, b2 = params["w2"], params["b2"]
    w3, b3 = params["w3"], params["b3"]

    B, obs_dim = x.shape
    n_actions = w3.shape[1]

    # Batch tile: multiple of 16 for bf16 sublane packing, 8 for f32.
    row_align = 16 if w1.dtype == jnp.bfloat16 else 8
    tb = min(block_b, _round_up(B, row_align))
    tb = _round_up(tb, row_align)
    num_blocks = pl.cdiv(B, tb)     # ragged tail handled by masked edge block

    # Weights/biases: constant index_map -> VMEM-resident across all steps.
    resident = lambda shape: pl.BlockSpec(shape, lambda i: (0, 0))

    out = pl.pallas_call(
        qnetwork_kernel,
        out_shape=jax.ShapeDtypeStruct((B, n_actions), jnp.float32),
        grid=(num_blocks,),
        in_specs=[
            pl.BlockSpec((tb, obs_dim), lambda i: (i, 0)),   # streamed input
            resident(w1.shape), resident(b1.shape),
            resident(w2.shape), resident(b2.shape),
            resident(w3.shape), resident(b3.shape),
        ],
        # Unpadded, exact-width output block (last dim == full array dim).
        out_specs=pl.BlockSpec((tb, n_actions), lambda i: (i, 0)),
        compiler_params=pltpu.CompilerParams(
            # Independent batch blocks -> shard across v7x's 2 TensorCores.
            dimension_semantics=("parallel",)),
    )(x, w1, b1, w2, b2, w3, b3)

    return out


def init_params(key, obs_dim, n_actions):
    """Deterministic synthetic init matching nn.Linear shapes (stored transposed)."""
    keys = jax.random.split(key, 6)

    def linear(kw, kb, fan_in, fan_out):
        # Same bound as PyTorch default nn.Linear init: U(-1/sqrt(fan_in), +).
        bound = 1.0 / jnp.sqrt(jnp.float32(fan_in))
        w = jax.random.uniform(kw, (fan_in, fan_out), jnp.float32, -bound, bound)
        b = jax.random.uniform(kb, (1, fan_out), jnp.float32, -bound, bound)
        return w, b

    w1, b1 = linear(keys[0], keys[1], obs_dim, 256)
    w2, b2 = linear(keys[2], keys[3], 256, 64)
    w3, b3 = linear(keys[4], keys[5], 64, n_actions)
    return {"w1": w1, "b1": b1, "w2": w2, "b2": b2, "w3": w3, "b3": b3}


def _ref_forward(x, p):
    h = jnp.maximum(x @ p["w1"] + p["b1"], 0.0)
    h = jnp.maximum(h @ p["w2"] + p["b2"], 0.0)
    return h @ p["w3"] + p["b3"]


if __name__ == "__main__":
    key = jax.random.PRNGKey(0)
    k_x, k_p, k_x2 = jax.random.split(key, 3)

    # Small synthetic env: observation_space.shape = (8,), action_space.n = 4
    batch = 8
    obs_dim = 8
    n_actions = 4

    x = jax.random.normal(k_x, (batch, obs_dim), jnp.float32)
    raw_params = init_params(k_p, obs_dim, n_actions)

    # One-time parameter preparation (hoisted out of the per-call wrapper).
    params_f32 = prepare_params(raw_params)

    # --- Tiny-batch path (single block, launch-latency regime). -------------
    q_values = jax.block_until_ready(qnetwork_forward(x, params_f32))
    ref = _ref_forward(x, raw_params)
    assert q_values.shape == (batch, n_actions)
    assert jnp.allclose(q_values, ref, atol=1e-4, rtol=1e-4)

    # --- Multi-block path with a ragged (masked) last block, no padding. ----
    x_big = jax.random.normal(k_x2, (50, obs_dim), jnp.float32)  # 50 % 16 != 0
    q_big = jax.block_until_ready(
        qnetwork_forward(x_big, params_f32, block_b=16))
    ref_big = _ref_forward(x_big, raw_params)
    assert q_big.shape == (50, n_actions)
    assert jnp.allclose(q_big, ref_big, atol=1e-4, rtol=1e-4)

    # --- bf16 MXU path (large-batch throughput config on v6e/v7x). ----------
    params_bf16 = prepare_params(raw_params, use_bf16=True)
    q_bf = jax.block_until_ready(
        qnetwork_forward(x_big, params_bf16, block_b=32))
    assert q_bf.shape == (50, n_actions)
    assert jnp.allclose(q_bf, ref_big, atol=5e-2, rtol=5e-2)

    print("KERNEL_OK")
</pallas_src>

<mosaic_0001>
module attributes {stable_mosaic.version = 11 : i64} {
  func.func @qnetwork_kernel(%arg0: i32, %arg1: memref<8x8xf32, #tpu.memory_space<vmem>>, %arg2: memref<8x256xf32, #tpu.memory_space<vmem>>, %arg3: memref<1x256xf32, #tpu.memory_space<vmem>>, %arg4: memref<256x64xf32, #tpu.memory_space<vmem>>, %arg5: memref<1x64xf32, #tpu.memory_space<vmem>>, %arg6: memref<64x4xf32, #tpu.memory_space<vmem>>, %arg7: memref<1x4xf32, #tpu.memory_space<vmem>>, %arg8: memref<8x4xf32, #tpu.memory_space<vmem>>) attributes {dimension_semantics = [#tpu.dimension_semantics<parallel>], iteration_bounds = array<i64: 1>, scalar_prefetch = 0 : i64, scratch_operands = 0 : i64, tpu.core_type = #tpu.core_type<tc>, window_params = [{transform_indices = @transform_0, window_bounds = array<i64: 8, 8>}, {pipeline_mode = #tpu.pipeline_mode<synchronous>, transform_indices = @transform_1, window_bounds = array<i64: 8, 256>}, {pipeline_mode = #tpu.pipeline_mode<synchronous>, transform_indices = @transform_2, window_bounds = array<i64: 1, 256>}, {pipeline_mode = #tpu.pipeline_mode<synchronous>, transform_indices = @transform_3, window_bounds = array<i64: 256, 64>}, {pipeline_mode = #tpu.pipeline_mode<synchronous>, transform_indices = @transform_4, window_bounds = array<i64: 1, 64>}, {pipeline_mode = #tpu.pipeline_mode<synchronous>, transform_indices = @transform_5, window_bounds = array<i64: 64, 4>}, {pipeline_mode = #tpu.pipeline_mode<synchronous>, transform_indices = @transform_6, window_bounds = array<i64: 1, 4>}, {transform_indices = @transform_7, window_bounds = array<i64: 8, 4>}]} {
    %c0 = arith.constant 0 : index
    %c0_0 = arith.constant 0 : index
    %0 = vector.load %arg1[%c0, %c0_0] : memref<8x8xf32, #tpu.memory_space<vmem>>, vector<8x8xf32>
    %c0_1 = arith.constant 0 : index
    %c0_2 = arith.constant 0 : index
    %1 = vector.load %arg2[%c0_1, %c0_2] : memref<8x256xf32, #tpu.memory_space<vmem>>, vector<8x256xf32>
    %cst = arith.constant dense<0.000000e+00> : vector<8x256xf32>
    %2 = tpu.matmul %0, %1, %cst {dimension_numbers = #tpu.dot_dimension_numbers<[1], [0], [0], [1], [0, 0, 1, 1], [], []>} : vector<8x8xf32>, vector<8x256xf32>, vector<8x256xf32> -> vector<8x256xf32>
    %c0_3 = arith.constant 0 : index
    %c0_4 = arith.constant 0 : index
    %3 = vector.load %arg3[%c0_3, %c0_4] : memref<1x256xf32, #tpu.memory_space<vmem>>, vector<1x256xf32>
    %4 = vector.broadcast %3 : vector<1x256xf32> to vector<8x256xf32>
    %5 = arith.addf %2, %4 : vector<8x256xf32>
    %cst_5 = arith.constant 0.000000e+00 : f32
    %6 = vector.broadcast %cst_5 : f32 to vector<8x256xf32>
    %7 = arith.maximumf %5, %6 : vector<8x256xf32>
    %c0_6 = arith.constant 0 : index
    %c0_7 = arith.constant 0 : index
    %8 = vector.load %arg4[%c0_6, %c0_7] : memref<256x64xf32, #tpu.memory_space<vmem>>, vector<256x64xf32>
    %cst_8 = arith.constant dense<0.000000e+00> : vector<8x64xf32>
    %9 = tpu.matmul %7, %8, %cst_8 {dimension_numbers = #tpu.dot_dimension_numbers<[1], [0], [0], [1], [0, 0, 1, 1], [], []>} : vector<8x256xf32>, vector<256x64xf32>, vector<8x64xf32> -> vector<8x64xf32>
    %c0_9 = arith.constant 0 : index
    %c0_10 = arith.constant 0 : index
    %10 = vector.load %arg5[%c0_9, %c0_10] : memref<1x64xf32, #tpu.memory_space<vmem>>, vector<1x64xf32>
    %11 = vector.broadcast %10 : vector<1x64xf32> to vector<8x64xf32>
    %12 = arith.addf %9, %11 : vector<8x64xf32>
    %cst_11 = arith.constant 0.000000e+00 : f32
    %13 = vector.broadcast %cst_11 : f32 to vector<8x64xf32>
    %14 = arith.maximumf %12, %13 : vector<8x64xf32>
    %c0_12 = arith.constant 0 : index
    %c0_13 = arith.constant 0 : index
    %15 = vector.load %arg6[%c0_12, %c0_13] : memref<64x4xf32, #tpu.memory_space<vmem>>, vector<64x4xf32>
    %cst_14 = arith.constant dense<0.000000e+00> : vector<8x4xf32>
    %16 = tpu.matmul %14, %15, %cst_14 {dimension_numbers = #tpu.dot_dimension_numbers<[1], [0], [0], [1], [0, 0, 1, 1], [], []>} : vector<8x64xf32>, vector<64x4xf32>, vector<8x4xf32> -> vector<8x4xf32>
    %c0_15 = arith.constant 0 : index
    %c0_16 = arith.constant 0 : index
    %17 = vector.load %arg7[%c0_15, %c0_16] : memref<1x4xf32, #tpu.memory_space<vmem>>, vector<1x4xf32>
    %18 = vector.broadcast %17 : vector<1x4xf32> to vector<8x4xf32>
    %19 = arith.addf %16, %18 : vector<8x4xf32>
    %c0_17 = arith.constant 0 : index
    %c0_18 = arith.constant 0 : index
    %20 = vector.load %arg8[%c0_17, %c0_18] : memref<8x4xf32, #tpu.memory_space<vmem>>, vector<8x4xf32>
    tpu.vector_store %arg8[%c0_17, %c0_18], %19 {strides = array<i32>} : memref<8x4xf32, #tpu.memory_space<vmem>>, vector<8x4xf32>,
    return
  }
  func.func @transform_0(%arg0: i32) -> (i32, i32) {
    %c0_i32 = arith.constant 0 : i32
    %c0_i32_0 = arith.constant 0 : i32
    return %arg0, %c0_i32 : i32, i32
  }
  func.func @transform_1(%arg0: i32) -> (i32, i32) {
    %c0_i32 = arith.constant 0 : i32
    %c0_i32_0 = arith.constant 0 : i32
    %c0_i32_1 = arith.constant 0 : i32
    return %c0_i32, %c0_i32_0 : i32, i32
  }
  func.func @transform_2(%arg0: i32) -> (i32, i32) {
    %c0_i32 = arith.constant 0 : i32
    %c0_i32_0 = arith.constant 0 : i32
    %c0_i32_1 = arith.constant 0 : i32
    return %c0_i32, %c0_i32_0 : i32, i32
  }
  func.func @transform_3(%arg0: i32) -> (i32, i32) {
    %c0_i32 = arith.constant 0 : i32
    %c0_i32_0 = arith.constant 0 : i32
    %c0_i32_1 = arith.constant 0 : i32
    return %c0_i32, %c0_i32_0 : i32, i32
  }
  func.func @transform_4(%arg0: i32) -> (i32, i32) {
    %c0_i32 = arith.constant 0 : i32
    %c0_i32_0 = arith.constant 0 : i32
    %c0_i32_1 = arith.constant 0 : i32
    return %c0_i32, %c0_i32_0 : i32, i32
  }
  func.func @transform_5(%arg0: i32) -> (i32, i32) {
    %c0_i32 = arith.constant 0 : i32
    %c0_i32_0 = arith.constant 0 : i32
    %c0_i32_1 = arith.constant 0 : i32
    return %c0_i32, %c0_i32_0 : i32, i32
  }
  func.func @transform_6(%arg0: i32) -> (i32, i32) {
    %c0_i32 = arith.constant 0 : i32
    %c0_i32_0 = arith.constant 0 : i32
    %c0_i32_1 = arith.constant 0 : i32
    return %c0_i32, %c0_i32_0 : i32, i32
  }
  func.func @transform_7(%arg0: i32) -> (i32, i32) {
    %c0_i32 = arith.constant 0 : i32
    %c0_i32_0 = arith.constant 0 : i32
    return %arg0, %c0_i32 : i32, i32
  }
}

</mosaic_0001>

<bundles_post_ra>
// kernel: qnetwork_forward.1
= control target key start
LH: loop header
LB: loop body
LE: loop exit
PB: predicated region body
PF: predicated region fallthrough
CT: control target
= control target key end

     0   :  { %v437_v2 = vmov 0.0   ;;  %vm41_vm0 = vcmask 64512   ;;  %v438_v52 = vmov 0.0|0.0   ;;  %v31_v59 = vlaneseq  ;;  %s623_s1 = inlined_call_operand.vmem [shape: f32[8,256], index: 1, kind: input, shape index: {}]   ;;  %s624_s0 = inlined_call_operand.vmem [shape: f32[8,8], index: 0, kind: input, shape index: {}]   ;;  %s625_s3 = inlined_call_operand.vmem [shape: f32[256,64], index: 3, kind: input, shape index: {}]   ;;  %s626_s5 = inlined_call_operand.vmem [shape: f32[64,4], index: 5, kind: input, shape index: {}]   ;;  %s627_s2 = inlined_call_operand.vmem [shape: f32[1,256], index: 2, kind: input, shape index: {}]   ;;  %s628_s4 = inlined_call_operand.vmem [shape: f32[1,64], index: 4, kind: input, shape index: {}]   ;;  %s629_s6 = inlined_call_operand.vmem [shape: f32[1,4], index: 6, kind: input, shape index: {}]   ;;  %s630_s7 = inlined_call_operand.vmem [shape: f32[8,4], index: 7, kind: output, shape index: {}]  }
   0x1   :  { %v28_v0 = vld [vmem:[%s623_s1 + $0x8] sm:$0xff]  ;;  %v27_v1 = vld [vmem:[%s623_s1] sm:$0xff]  ;;  %109 = vmatprep.mubr.f32.mxu0 %v437_v2  ;;  %v136_v9 = vld [vmem:[%s625_s3 + $0x90] sm:$0xff]  ;;  %vm439_vm1 = vmmov 0   ;;  %vm243_vm2 = vcmask 523264   ;;  %vm317_vm3 = vcmask 31744  }
   0x2   :  { %v26_v3 = vld [vmem:[%s624_s0] sm:$0xff]  ;;  %45 = vmatprep.subr.mxu0 %v28_v0  ;;  %v135_v5 = vld [vmem:[%s625_s3 + $0x88] sm:$0xff]  ;;  %v137_v10 = vld [vmem:[%s625_s3 + $0x98] sm:$0xff]  ;;  %v32_v60 = vshrl.u32 %v31_v59, 7 }
   0x3   :  { %v134_v4 = vld [vmem:[%s625_s3 + $0x80] sm:$0xff]  ;;  %46 = vmatpush1.msra.mxu0 %v27_v1  ;;  %v119_v8 = vld [vmem:[%s625_s3 + $0x8] sm:$0xff]  ;;  %v394_v12 = vpack.c.bf16 %v137_v10, %v136_v9  ;;  %v120_v13 = vld [vmem:[%s625_s3 + $0x10] sm:$0xff] }
   0x4   :  { %v118_v6 = vld [vmem:[%s625_s3] sm:$0xff]  ;;  %v390_v7 = vpack.c.bf16 %v135_v5, %v134_v4  ;;  %323 = vmatmul.mubr.msk.f32.vlgmr.msra.gmra.mrb[0].mxu0 %vm41_vm0, %v26_v3  ;;  %v121_v14 = vld [vmem:[%s625_s3 + $0x18] sm:$0xff]  ;;  %v139_v16 = vld [vmem:[%s625_s3 + $0xa8] sm:$0xff]  ;;  %422 = vmatprep.subr.bf16.mxu0 %v438_v52  ;;  %v33_v61 = vsub.s32 0, %v32_v60  ;;  %v37_v63 = vsub.s32 1, %v32_v60 }
   0x5   :  { %v392_v11 = vpack.c.bf16 %v119_v8, %v118_v6  ;;  %v138_v15 = vld [vmem:[%s625_s3 + $0xa0] sm:$0xff]  ;;  %v396_v17 = vpack.c.bf16 %v121_v14, %v120_v13  ;;  %v123_v20 = vld [vmem:[%s625_s3 + $0x28] sm:$0xff]  ;;  %v140_v21 = vld [vmem:[%s625_s3 + $0xb0] sm:$0xff]  ;;  %387 = vmatprep.mubr.msk.f32.mxu0 %vm439_vm1, %v437_v2 }
   0x6   :  { %391 = vmatprep.subr.bf16.mxu1 %v390_v7  ;;  %v398_v18 = vpack.c.bf16 %v139_v16, %v138_v15  ;;  %v122_v19 = vld [vmem:[%s625_s3 + $0x20] sm:$0xff]  ;;  %v141_v22 = vld [vmem:[%s625_s3 + $0xb8] sm:$0xff]  ;;  %v124_v25 = vld [vmem:[%s625_s3 + $0x30] sm:$0xff] }
   0x7   :  { %393 = vmatpush3.bf16.msra.mxu1 %v392_v11  ;;  %v400_v23 = vpack.c.bf16 %v123_v20, %v122_v19  ;;  %v402_v24 = vpack.c.bf16 %v141_v22, %v140_v21  ;;  %v125_v26 = vld [vmem:[%s625_s3 + $0x38] sm:$0xff]  ;;  %v142_v27 = vld [vmem:[%s625_s3 + $0xc0] sm:$0xff]  ;;  %v143_v28 = vld [vmem:[%s625_s3 + $0xc8] sm:$0xff] }
   0x8   :  { %395 = vmatprep.subr.bf16.mxu1 %v394_v12  ;;  %v404_v29 = vpack.c.bf16 %v125_v26, %v124_v25  ;;  %v406_v30 = vpack.c.bf16 %v143_v28, %v142_v27  ;;  %v126_v31 = vld [vmem:[%s625_s3 + $0x40] sm:$0xff]  ;;  %v127_v32 = vld [vmem:[%s625_s3 + $0x48] sm:$0xff]  ;;  %v144_v33 = vld [vmem:[%s625_s3 + $0xd0] sm:$0xff] }
   0x9   :  { %v145_v34 = vld [vmem:[%s625_s3 + $0xd8] sm:$0xff]  ;;  %v408_v35 = vpack.c.bf16 %v127_v32, %v126_v31  ;;  %v128_v37 = vld [vmem:[%s625_s3 + $0x50] sm:$0xff]  ;;  %v146_v39 = vld [vmem:[%s625_s3 + $0xe0] sm:$0xff] }
   0xa   :  { %v410_v36 = vpack.c.bf16 %v145_v34, %v144_v33  ;;  %v129_v38 = vld [vmem:[%s625_s3 + $0x58] sm:$0xff]  ;;  %v147_v40 = vld [vmem:[%s625_s3 + $0xe8] sm:$0xff]  ;;  %v130_v43 = vld [vmem:[%s625_s3 + $0x60] sm:$0xff] }
   0xb   :  { %397 = vmatpush3.bf16.msra.mxu1 %v396_v17  ;;  %v412_v41 = vpack.c.bf16 %v129_v38, %v128_v37  ;;  %v414_v42 = vpack.c.bf16 %v147_v40, %v146_v39  ;;  %v131_v44 = vld [vmem:[%s625_s3 + $0x68] sm:$0xff]  ;;  %v148_v46 = vld [vmem:[%s625_s3 + $0xf0] sm:$0xff]  ;;  %v149_v47 = vld [vmem:[%s625_s3 + $0xf8] sm:$0xff] }
   0xc   :  { %399 = vmatprep.subr.bf16.mxu1 %v398_v18  ;;  %v416_v45 = vpack.c.bf16 %v131_v44, %v130_v43  ;;  %v418_v48 = vpack.c.bf16 %v149_v47, %v148_v46  ;;  %v132_v49 = vld [vmem:[%s625_s3 + $0x70] sm:$0xff]  ;;  %v133_v50 = vld [vmem:[%s625_s3 + $0x78] sm:$0xff]  ;;  %v228_v53 = vld [vmem:[%s626_s5] sm:$0xff] }
   0xd   :  { %v420_v51 = vpack.c.bf16 %v133_v50, %v132_v49  ;;  %v229_v54 = vld [vmem:[%s626_s5 + $0x8] sm:$0xff]  ;;  %v230_v55 = vld [vmem:[%s626_s5 + $0x10] sm:$0xff]  ;;  %v231_v57 = vld [vmem:[%s626_s5 + $0x18] sm:$0xff] }
   0xe   :  { %v423_v56 = vpack.c.bf16 %v229_v54, %v228_v53  ;;  %v426_v58 = vpack.c.bf16 %v231_v57, %v230_v55  ;;  %v29_v62 = vld [vmem:[%s627_s2] sm:$0x3]  ;;  %v233_v10 = vld [vmem:[%s626_s5 + $0x28] sm:$0xff]  ;;  %v234_v12 = vld [vmem:[%s626_s5 + $0x30] sm:$0xff] }
   0xf   :  { %401 = vmatpush3.bf16.msra.mxu1 %v400_v23  ;;  %v34_v0 = vrot.slane %v29_v62, %v33_v61  ;;  %v38_v1 = vrot.slane %v29_v62, %v37_v63  ;;  %v232_v9 = vld [vmem:[%s626_s5 + $0x20] sm:$0xff]  ;;  %v235_v13 = vld [vmem:[%s626_s5 + $0x38] sm:$0xff] }
  0x10   :  { %403 = vmatprep.subr.bf16.mxu1 %v402_v24  ;;  %424 = vmatpush3.bf16.msra.mxu0 %v423_v56  ;;  %v429_v11 = vpack.c.bf16 %v233_v10, %v232_v9  ;;  %v432_v14 = vpack.c.bf16 %v235_v13, %v234_v12  ;;  %v324_v16 = vld [vmem:[%s628_s4] ss:$0 sm:$0xff] }
  0x11   :  { %425 = vmatprep.subr.bf16.mxu0 %v438_v52  ;;  %v325_v21 = vld [vmem:[%s629_s6] ss:$0 sm:$0xff] }
  0x13   :  { %405 = vmatpush3.bf16.msra.mxu1 %v404_v29 }
  0x14   :  { %407 = vmatprep.subr.bf16.mxu1 %v406_v30  ;;  %427 = vmatpush3.bf16.msra.mxu0 %v426_v58 }
  0x15   :  { %428 = vmatprep.subr.bf16.mxu0 %v438_v52 }
  0x17   :  { %409 = vmatpush3.bf16.msra.mxu1 %v408_v35 }
  0x18   :  { %411 = vmatprep.subr.bf16.mxu1 %v410_v36  ;;  %430 = vmatpush3.bf16.msra.mxu0 %v429_v11 }
  0x19   :  { %431 = vmatprep.subr.bf16.mxu0 %v438_v52 }
  0x1b   :  { %413 = vmatpush3.bf16.msra.mxu1 %v412_v41 }
  0x1c   :  { %415 = vmatprep.subr.bf16.mxu1 %v414_v42  ;;  %433 = vmatpush3.bf16.msra.mxu0 %v432_v14 }
  0x1f   :  { %417 = vmatpush3.bf16.msra.mxu1 %v416_v45 }
  0x20   :  { %419 = vmatprep.subr.bf16.mxu1 %v418_v48 }
  0x23   :  { %421 = vmatpush3.bf16.msra.mxu1 %v420_v51 }
  0xd7   :  { %v111_v3 = vpop.f32.mrb[0].mxu0 }
  0xd8   :  { %v112_v4 = vadd.f32 %v111_v3, %v34_v0  ;;  %v113_v5 = vpop.f32.mrb[1].mxu0 }
  0xd9   :  { %v114_v6 = vadd.f32 %v113_v5, %v38_v1 }
  0xda   :  { %v116_v8 = vmax.f32 %v112_v4, 0.0 }
  0xdb   :  { %v117_v7 = vmax.f32 %v114_v6, 0.0 }
  0xdd   :  { %221 = vmatprep.mubr.f32.mxu1 %v117_v7 }
  0xde   :  { %222 = vmatmul.mubr.f32.vlgmr.msra.gmra.mrb[0].mxu1 %v116_v8 }
 0x1b1   :  { %v359_v15 = vpop.f32.mrb[0].mxu1 }
 0x1b2   :  { %v360_v17 = vpop.f32.mrb[1].mxu1 }
 0x1b3   :  { %v361_v18 = vadd.f32 %v360_v17, %v359_v15 }
 0x1b5   :  { %v224_v19 = vadd.f32 %v361_v18, %v324_v16 }
 0x1b7   :  { %v227_v20 = vmax.f32 %v224_v19, 0.0 }
 0x1b9   :  { %388 = vmatmul.mubr.msk.f32.vlgmr.msra.gmra.mrb[2].mxu0 %vm243_vm2, %v227_v20 }
 0x28c   :  { %v313_v22 = vpop.f32.mrb[2].mxu0 }
 0x28d   :  { %v314_v23 = vadd.f32 %v325_v21, %v313_v22  ;;  %v389_v24 = vpop.f32.mrb[3].mxu0 }
 0x28f   :  { %318 = vst.msk [vmem:[%s630_s7] sm:$0xff] %vm317_vm3, %v314_v23 }

</bundles_post_ra>
